<compile_context>
chip_gen: v6e
topology: v6e:2x2x1
jax: 0.10.0
libtpu: 0.0.40
codegen_flags: <defaults>
</compile_context>

<pallas_src>
import jax
import jax.numpy as jnp
from jax.experimental import pallas as pl
from jax.experimental.pallas import tpu as pltpu

_EPS = 1e-5

# Row indices inside the stacked (9, D) parameter slab.
(_W_BASE, _W_LORA, _W_CROSS, _W_OUT, _BIAS,
 _G_BASE, _B_BASE, _G_LORA, _B_LORA) = range(9)


def _lora_merger_kernel(base_ref, lora_ref, p_ref, out_ref):
    d = base_ref.shape[-1]
    n_lora = lora_ref.shape[0]
    inv_d = 1.0 / d

    def prow(k):
        # Load one (1, D) parameter row straight from the ref (no 9xD vreg slab).
        return p_ref[k:k + 1, :].astype(jnp.float32)

    wb, wl, wc = prow(_W_BASE), prow(_W_LORA), prow(_W_CROSS)
    wo, bias = prow(_W_OUT), prow(_BIAS)
    gb, bb = prow(_G_BASE), prow(_B_BASE)
    gl, bl = prow(_G_LORA), prow(_B_LORA)

    base = base_ref[...].astype(jnp.float32)                  # (TR, D)

    # Two-pass LayerNorm(base): mean, then centered sum of squares (biased var).
    mu = jnp.sum(base, axis=-1, keepdims=True) * inv_d
    bc = base - mu
    var = jnp.sum(bc * bc, axis=-1, keepdims=True) * inv_d
    nb = bc * jax.lax.rsqrt(var + _EPS) * gb + bb             # (TR, D)

    # n-invariant gate algebra: gate_n = sigmoid(C + xhat_n * Bg)
    a_term = nb * wb + bias
    b_term = wl + nb * wc
    c_term = a_term + bl * b_term                              # (TR, D)
    bg_term = gl * b_term                                      # (TR, D)

    def lora_step(n, acc):
        x = lora_ref[n].astype(jnp.float32)                    # (TR, D)
        m = jnp.sum(x, axis=-1, keepdims=True) * inv_d
        xc = x - m
        v = jnp.sum(xc * xc, axis=-1, keepdims=True) * inv_d
        xhat = xc * jax.lax.rsqrt(v + _EPS)
        gate = jax.nn.sigmoid(c_term + xhat * bg_term)         # EUP sigmoid
        return acc + gate * x

    acc = jnp.zeros_like(base)                                 # sum_n gate_n * lora_n
    if n_lora <= 4:
        # Small static stack: unroll so the LLO scheduler sees everything.
        for n in range(n_lora):
            acc = lora_step(n, acc)
    else:
        # Large stacks: bound live ranges with a real loop (avoids (N,TR,D) live set).
        acc = jax.lax.fori_loop(0, n_lora, lora_step, acc, unroll=2)

    out_ref[...] = (base + wo * acc).astype(out_ref.dtype)


def _round_up(x, m):
    return (x + m - 1) // m * m


def _vmem_budgets():
    """(block_budget_bytes, vmem_limit_bytes), generation-aware."""
    cap = None
    try:
        cap = getattr(pltpu.get_tpu_info(), "vmem_capacity_bytes", None)
    except Exception:
        cap = None
    if cap is not None and cap >= 100 * 1024 * 1024:
        # v5e / v6e: 128 MiB physical VMEM per TensorCore -> bigger blocks.
        return 56 * 1024 * 1024, 100 * 1024 * 1024
    # v7x (64 MiB per TC) or unknown: stay conservative.
    return 26 * 1024 * 1024, 48 * 1024 * 1024


def _even_steps_tile(n_rows, tile, sub):
    """Largest tile <= `tile` (multiple of `sub`) whose grid step count is even.
    Falls back to the original tile if no even split exists (rare; perf-only)."""
    t = tile
    while t >= sub:
        if pl.cdiv(n_rows, t) % 2 == 0:
            return t
        t -= sub
    return tile


def _choose_row_tile(n_rows, dim, n_lora, itemsize, vmem_block_budget):
    """Pick a row tile so double-buffered I/O blocks + f32 intermediates fit the
    generation-aware VMEM budget."""
    # Double-buffered I/O blocks (base + N*lora + out) + ~7 live f32 (TR, D) temps.
    per_row = itemsize * dim * 2 * (2 + n_lora) + 4 * dim * 7
    fixed = 2 * 9 * dim * 4            # double-buffered (9, D) f32 parameter slab
    sub = 8 if itemsize >= 4 else 16   # sublane tile for the I/O dtype (f32 vs bf16)
    tile = max(sub, ((vmem_block_budget - fixed) // per_row) // sub * sub)
    tile = min(tile, 1024)
    r_ceil = _round_up(n_rows, sub)
    tile = min(tile, r_ceil)

    steps = pl.cdiv(n_rows, tile)
    if r_ceil > sub and (steps < 2 or steps % 2 == 1):
        if steps < 2:
            # At least 2 steps so v7x's two TensorCores both get work.
            tile = min(tile, max(sub, _round_up(pl.cdiv(n_rows, 2), sub)))
        tile = _even_steps_tile(n_rows, tile, sub)
    return tile


def lora_merger_forward(base_output, lora_outputs, stacked_params, *, row_tile=None):
    """base_output: (..., D); lora_outputs: (N, ..., D); stacked_params: (9, D)."""
    orig_shape = base_output.shape
    D = orig_shape[-1]
    N = lora_outputs.shape[0]

    base2d = base_output.reshape(-1, D)                 # (R, D)
    lora3d = lora_outputs.reshape(N, -1, D)             # (N, R, D)
    R = base2d.shape[0]

    itemsize = jnp.dtype(base_output.dtype).itemsize
    block_budget, vmem_limit = _vmem_budgets()
    if row_tile is None:
        row_tile = _choose_row_tile(R, D, N, itemsize, block_budget)

    out2d = pl.pallas_call(
        _lora_merger_kernel,
        out_shape=jax.ShapeDtypeStruct((R, D), base_output.dtype),
        grid_spec=pltpu.PrefetchScalarGridSpec(
            num_scalar_prefetch=0,
            grid=(pl.cdiv(R, row_tile),),               # partial last block handled by Pallas
            in_specs=[
                pl.BlockSpec((row_tile, D), lambda i: (i, 0)),        # base rows
                pl.BlockSpec((N, row_tile, D), lambda i: (0, i, 0)),  # lora stack rows
                pl.BlockSpec((9, D), lambda i: (0, 0)),               # stacked params
            ],
            out_specs=pl.BlockSpec((row_tile, D), lambda i: (i, 0)),
        ),
        compiler_params=pltpu.CompilerParams(
            dimension_semantics=("parallel",),
            vmem_limit_bytes=vmem_limit,
        ),
    )(base2d, lora3d, stacked_params)

    return out2d.reshape(orig_shape)


def init_lora_merger_params(key, dim):
    """Deterministic init matching LoraMerger.__init__ shapes (randn / ones / LN defaults)."""
    k1, k2, k3, k4 = jax.random.split(key, 4)
    return {
        "weight_base": jax.random.normal(k1, (dim,), jnp.float32),
        "weight_lora": jax.random.normal(k2, (dim,), jnp.float32),
        "weight_cross": jax.random.normal(k3, (dim,), jnp.float32),
        "weight_out": jnp.ones((dim,), jnp.float32),
        "bias": jax.random.normal(k4, (dim,), jnp.float32),
        "norm_base_gamma": jnp.ones((dim,), jnp.float32),   # LayerNorm default affine
        "norm_base_beta": jnp.zeros((dim,), jnp.float32),
        "norm_lora_gamma": jnp.ones((dim,), jnp.float32),
        "norm_lora_beta": jnp.zeros((dim,), jnp.float32),
    }


def stack_lora_merger_params(p):
    """Stack the 9 per-channel vectors into one (9, D) slab (one DMA in the kernel)."""
    return jnp.stack(
        [p["weight_base"], p["weight_lora"], p["weight_cross"], p["weight_out"],
         p["bias"], p["norm_base_gamma"], p["norm_base_beta"],
         p["norm_lora_gamma"], p["norm_lora_beta"]],
        axis=0,
    )


class FluxLoraPatcher:
    """JAX/Pallas port of FluxLoraPatcher: a dict of per-layer LoraMerger params."""

    def __init__(self, lora_patterns=None, key=jax.random.PRNGKey(0)):
        if lora_patterns is None:
            lora_patterns = self.default_lora_patterns()
        self.params = {}
        self.stacked_params = {}
        for i, pattern in enumerate(lora_patterns):
            name, dim = pattern["name"], pattern["dim"]
            subkey = jax.random.fold_in(key, i)
            pname = name.replace(".", "___")
            self.params[pname] = init_lora_merger_params(subkey, dim)
            self.stacked_params[pname] = stack_lora_merger_params(self.params[pname])

    @staticmethod
    def default_lora_patterns():
        lora_patterns = []
        lora_dict = {'attn.a_to_qkv': 9216, 'attn.a_to_out': 3072, 'ff_a.0': 12288,
                     'ff_a.2': 3072, 'norm1_a.linear': 18432, 'attn.b_to_qkv': 9216,
                     'attn.b_to_out': 3072, 'ff_b.0': 12288, 'ff_b.2': 3072,
                     'norm1_b.linear': 18432}
        for i in range(19):
            for suffix in lora_dict:
                lora_patterns.append({'name': f'blocks.{i}.{suffix}', 'dim': lora_dict[suffix]})
        lora_dict = {'to_qkv_mlp': 21504, 'proj_out': 3072, 'norm.linear': 9216}
        for i in range(38):
            lora_patterns.extend({'name': f'single_blocks.{i}.{suffix}',
                                  'dim': lora_dict[suffix]} for suffix in lora_dict)
        return lora_patterns

    def __call__(self, base_output, lora_outputs, name):
        return lora_merger_forward(base_output, lora_outputs,
                                   self.stacked_params[name.replace(".", "___")])


def _reference_forward(base, lora, p):
    """Pure-JAX reference of LoraMerger.forward (two-pass LN, like torch)."""
    eps = 1e-5

    def ln(x, g, b):
        mu = jnp.mean(x, axis=-1, keepdims=True)
        var = jnp.mean((x - mu) ** 2, axis=-1, keepdims=True)
        return (x - mu) / jnp.sqrt(var + eps) * g + b

    nb = ln(base, p["norm_base_gamma"], p["norm_base_beta"])
    nl = ln(lora, p["norm_lora_gamma"], p["norm_lora_beta"])
    gate = jax.nn.sigmoid(nb * p["weight_base"] + nl * p["weight_lora"]
                          + nb * nl * p["weight_cross"] + p["bias"])
    return base + (p["weight_out"] * gate * lora).sum(axis=0)


if __name__ == "__main__":
    key = jax.random.PRNGKey(0)

    # Small synthetic shapes consistent with the module's forward:
    #   base_output: (batch, seq, dim), lora_outputs: (n_lora, batch, seq, dim)
    B, S, D, N = 2, 8, 256, 3
    patterns = [{"name": "blocks.0.attn.a_to_qkv", "dim": D},
                {"name": "single_blocks.0.proj_out", "dim": D},
                {"name": "blocks.1.ff_a.2", "dim": 3072}]
    patcher = FluxLoraPatcher(lora_patterns=patterns, key=key)

    kb, kl = jax.random.split(jax.random.fold_in(key, 12345))
    base_output = jax.random.normal(kb, (B, S, D), jnp.float32)
    lora_outputs = jax.random.normal(kl, (N, B, S, D), jnp.float32)

    out = patcher(base_output, lora_outputs, "blocks.0.attn.a_to_qkv")
    out = jax.block_until_ready(out)
    ref = _reference_forward(base_output, lora_outputs,
                             patcher.params["blocks___0___attn___a_to_qkv"])
    assert out.shape == base_output.shape
    assert jnp.allclose(out, ref, atol=1e-3, rtol=1e-3), "mismatch vs reference"

    # Non-divisible row count: exercises the cdiv grid / partial-last-block path.
    B2, S2 = 3, 7
    base2 = jax.random.normal(jax.random.fold_in(key, 7), (B2, S2, D), jnp.float32)
    lora2 = jax.random.normal(jax.random.fold_in(key, 8), (N, B2, S2, D), jnp.float32)
    out2 = jax.block_until_ready(patcher(base2, lora2, "single_blocks.0.proj_out"))
    ref2 = _reference_forward(base2, lora2, patcher.params["single_blocks___0___proj_out"])
    assert out2.shape == base2.shape
    assert jnp.allclose(out2, ref2, atol=1e-3, rtol=1e-3), "mismatch (partial block)"

    # Production-style feature dim with non-zero mean (LayerNorm numerics check).
    D3, R3, N3 = 3072, 64, 2
    base3 = jax.random.normal(jax.random.fold_in(key, 9), (1, R3, D3), jnp.float32) + 5.0
    lora3 = jax.random.normal(jax.random.fold_in(key, 10), (N3, 1, R3, D3), jnp.float32) + 5.0
    out3 = jax.block_until_ready(patcher(base3, lora3, "blocks.1.ff_a.2"))
    ref3 = _reference_forward(base3, lora3, patcher.params["blocks___1___ff_a___2"])
    assert out3.shape == base3.shape
    assert jnp.allclose(out3, ref3, atol=5e-3, rtol=5e-3), "mismatch (large-D, nonzero mean)"

    # bf16 I/O path (sublane tile 16, f32 compute inside the kernel).
    base4 = base_output.astype(jnp.bfloat16)
    lora4 = lora_outputs.astype(jnp.bfloat16)
    out4 = jax.block_until_ready(patcher(base4, lora4, "blocks.0.attn.a_to_qkv"))
    ref4 = _reference_forward(base4.astype(jnp.float32), lora4.astype(jnp.float32),
                              patcher.params["blocks___0___attn___a_to_qkv"])
    assert out4.dtype == jnp.bfloat16 and out4.shape == base_output.shape
    assert jnp.allclose(out4.astype(jnp.float32), ref4, atol=1e-1, rtol=5e-2), "mismatch (bf16)"

    print("KERNEL_OK")
</pallas_src>

<mosaic_0001>
module attributes {stable_mosaic.version = 11 : i64} {
  func.func @_lora_merger_kernel(%arg0: i32, %arg1: memref<8x256xf32, #tpu.memory_space<vmem>>, %arg2: memref<3x8x256xf32, #tpu.memory_space<vmem>>, %arg3: memref<9x256xf32, #tpu.memory_space<vmem>>, %arg4: memref<8x256xf32, #tpu.memory_space<vmem>>) attributes {dimension_semantics = [#tpu.dimension_semantics<parallel>], iteration_bounds = array<i64: 2>, scalar_prefetch = 0 : i64, scratch_operands = 0 : i64, tpu.core_type = #tpu.core_type<tc>, window_params = [{transform_indices = @transform_0, window_bounds = array<i64: 8, 256>}, {transform_indices = @transform_1, window_bounds = array<i64: 3, 8, 256>}, {pipeline_mode = #tpu.pipeline_mode<synchronous>, transform_indices = @transform_2, window_bounds = array<i64: 9, 256>}, {transform_indices = @transform_3, window_bounds = array<i64: 8, 256>}]} {
    %c0 = arith.constant 0 : index
    %c0_0 = arith.constant 0 : index
    %0 = vector.load %arg3[%c0, %c0_0] : memref<9x256xf32, #tpu.memory_space<vmem>>, vector<1x256xf32>
    %c1 = arith.constant 1 : index
    %c0_1 = arith.constant 0 : index
    %1 = vector.load %arg3[%c1, %c0_1] : memref<9x256xf32, #tpu.memory_space<vmem>>, vector<1x256xf32>
    %c2 = arith.constant 2 : index
    %c0_2 = arith.constant 0 : index
    %2 = vector.load %arg3[%c2, %c0_2] : memref<9x256xf32, #tpu.memory_space<vmem>>, vector<1x256xf32>
    %c3 = arith.constant 3 : index
    %c0_3 = arith.constant 0 : index
    %3 = vector.load %arg3[%c3, %c0_3] : memref<9x256xf32, #tpu.memory_space<vmem>>, vector<1x256xf32>
    %c4 = arith.constant 4 : index
    %c0_4 = arith.constant 0 : index
    %4 = vector.load %arg3[%c4, %c0_4] : memref<9x256xf32, #tpu.memory_space<vmem>>, vector<1x256xf32>
    %c5 = arith.constant 5 : index
    %c0_5 = arith.constant 0 : index
    %5 = vector.load %arg3[%c5, %c0_5] : memref<9x256xf32, #tpu.memory_space<vmem>>, vector<1x256xf32>
    %c6 = arith.constant 6 : index
    %c0_6 = arith.constant 0 : index
    %6 = vector.load %arg3[%c6, %c0_6] : memref<9x256xf32, #tpu.memory_space<vmem>>, vector<1x256xf32>
    %c7 = arith.constant 7 : index
    %c0_7 = arith.constant 0 : index
    %7 = vector.load %arg3[%c7, %c0_7] : memref<9x256xf32, #tpu.memory_space<vmem>>, vector<1x256xf32>
    %c8 = arith.constant 8 : index
    %c0_8 = arith.constant 0 : index
    %8 = vector.load %arg3[%c8, %c0_8] : memref<9x256xf32, #tpu.memory_space<vmem>>, vector<1x256xf32>
    %c0_9 = arith.constant 0 : index
    %c0_10 = arith.constant 0 : index
    %9 = vector.load %arg1[%c0_9, %c0_10] : memref<8x256xf32, #tpu.memory_space<vmem>>, vector<8x256xf32>
    %cst = arith.constant dense<0.000000e+00> : vector<8xf32>
    %10 = vector.multi_reduction <add>, %9, %cst [1] : vector<8x256xf32> to vector<8xf32>
    %11 = vector.shape_cast %10 : vector<8xf32> to vector<8x1xf32>
    %cst_11 = arith.constant 3.906250e-03 : f32
    %12 = vector.broadcast %cst_11 : f32 to vector<8x1xf32>
    %13 = arith.mulf %11, %12 : vector<8x1xf32>
    %14 = vector.broadcast %13 : vector<8x1xf32> to vector<8x256xf32>
    %15 = arith.subf %9, %14 : vector<8x256xf32>
    %16 = arith.mulf %15, %15 : vector<8x256xf32>
    %cst_12 = arith.constant dense<0.000000e+00> : vector<8xf32>
    %17 = vector.multi_reduction <add>, %16, %cst_12 [1] : vector<8x256xf32> to vector<8xf32>
    %18 = vector.shape_cast %17 : vector<8xf32> to vector<8x1xf32>
    %cst_13 = arith.constant 3.906250e-03 : f32
    %19 = vector.broadcast %cst_13 : f32 to vector<8x1xf32>
    %20 = arith.mulf %18, %19 : vector<8x1xf32>
    %cst_14 = arith.constant 9.99999974E-6 : f32
    %21 = vector.broadcast %cst_14 : f32 to vector<8x1xf32>
    %22 = arith.addf %20, %21 : vector<8x1xf32>
    %23 = math.rsqrt %22 : vector<8x1xf32>
    %24 = vector.broadcast %23 : vector<8x1xf32> to vector<8x256xf32>
    %25 = arith.mulf %15, %24 : vector<8x256xf32>
    %26 = vector.broadcast %5 : vector<1x256xf32> to vector<8x256xf32>
    %27 = arith.mulf %25, %26 : vector<8x256xf32>
    %28 = vector.broadcast %6 : vector<1x256xf32> to vector<8x256xf32>
    %29 = arith.addf %27, %28 : vector<8x256xf32>
    %30 = vector.broadcast %0 : vector<1x256xf32> to vector<8x256xf32>
    %31 = arith.mulf %29, %30 : vector<8x256xf32>
    %32 = vector.broadcast %4 : vector<1x256xf32> to vector<8x256xf32>
    %33 = arith.addf %31, %32 : vector<8x256xf32>
    %34 = vector.broadcast %2 : vector<1x256xf32> to vector<8x256xf32>
    %35 = arith.mulf %29, %34 : vector<8x256xf32>
    %36 = vector.broadcast %1 : vector<1x256xf32> to vector<8x256xf32>
    %37 = arith.addf %36, %35 : vector<8x256xf32>
    %38 = vector.broadcast %8 : vector<1x256xf32> to vector<8x256xf32>
    %39 = arith.mulf %38, %37 : vector<8x256xf32>
    %40 = arith.addf %33, %39 : vector<8x256xf32>
    %41 = vector.broadcast %7 : vector<1x256xf32> to vector<8x256xf32>
    %42 = arith.mulf %41, %37 : vector<8x256xf32>
    %cst_15 = arith.constant 0.000000e+00 : f32
    %43 = vector.broadcast %cst_15 : f32 to vector<8x256xf32>
    %c0_16 = arith.constant 0 : index
    %c0_17 = arith.constant 0 : index
    %c0_18 = arith.constant 0 : index
    %44 = vector.load %arg2[%c0_16, %c0_17, %c0_18] : memref<3x8x256xf32, #tpu.memory_space<vmem>>, vector<1x8x256xf32>
    %45 = vector.shape_cast %44 : vector<1x8x256xf32> to vector<8x256xf32>
    %cst_19 = arith.constant dense<0.000000e+00> : vector<8xf32>
    %46 = vector.multi_reduction <add>, %45, %cst_19 [1] : vector<8x256xf32> to vector<8xf32>
    %47 = vector.shape_cast %46 : vector<8xf32> to vector<8x1xf32>
    %cst_20 = arith.constant 3.906250e-03 : f32
    %48 = vector.broadcast %cst_20 : f32 to vector<8x1xf32>
    %49 = arith.mulf %47, %48 : vector<8x1xf32>
    %50 = vector.broadcast %49 : vector<8x1xf32> to vector<8x256xf32>
    %51 = arith.subf %45, %50 : vector<8x256xf32>
    %52 = arith.mulf %51, %51 : vector<8x256xf32>
    %cst_21 = arith.constant dense<0.000000e+00> : vector<8xf32>
    %53 = vector.multi_reduction <add>, %52, %cst_21 [1] : vector<8x256xf32> to vector<8xf32>
    %54 = vector.shape_cast %53 : vector<8xf32> to vector<8x1xf32>
    %cst_22 = arith.constant 3.906250e-03 : f32
    %55 = vector.broadcast %cst_22 : f32 to vector<8x1xf32>
    %56 = arith.mulf %54, %55 : vector<8x1xf32>
    %cst_23 = arith.constant 9.99999974E-6 : f32
    %57 = vector.broadcast %cst_23 : f32 to vector<8x1xf32>
    %58 = arith.addf %56, %57 : vector<8x1xf32>
    %59 = math.rsqrt %58 : vector<8x1xf32>
    %60 = vector.broadcast %59 : vector<8x1xf32> to vector<8x256xf32>
    %61 = arith.mulf %51, %60 : vector<8x256xf32>
    %62 = arith.mulf %61, %42 : vector<8x256xf32>
    %63 = arith.addf %40, %62 : vector<8x256xf32>
    %64 = arith.negf %63 : vector<8x256xf32>
    %65 = math.exp %64 : vector<8x256xf32>
    %cst_24 = arith.constant 1.000000e+00 : f32
    %66 = vector.broadcast %cst_24 : f32 to vector<8x256xf32>
    %67 = arith.addf %66, %65 : vector<8x256xf32>
    %68 = arith.divf %66, %67 : vector<8x256xf32>
    %69 = arith.mulf %68, %45 : vector<8x256xf32>
    %70 = arith.addf %43, %69 : vector<8x256xf32>
    %c1_25 = arith.constant 1 : index
    %c0_26 = arith.constant 0 : index
    %c0_27 = arith.constant 0 : index
    %71 = vector.load %arg2[%c1_25, %c0_26, %c0_27] : memref<3x8x256xf32, #tpu.memory_space<vmem>>, vector<1x8x256xf32>
    %72 = vector.shape_cast %71 : vector<1x8x256xf32> to vector<8x256xf32>
    %cst_28 = arith.constant dense<0.000000e+00> : vector<8xf32>
    %73 = vector.multi_reduction <add>, %72, %cst_28 [1] : vector<8x256xf32> to vector<8xf32>
    %74 = vector.shape_cast %73 : vector<8xf32> to vector<8x1xf32>
    %cst_29 = arith.constant 3.906250e-03 : f32
    %75 = vector.broadcast %cst_29 : f32 to vector<8x1xf32>
    %76 = arith.mulf %74, %75 : vector<8x1xf32>
    %77 = vector.broadcast %76 : vector<8x1xf32> to vector<8x256xf32>
    %78 = arith.subf %72, %77 : vector<8x256xf32>
    %79 = arith.mulf %78, %78 : vector<8x256xf32>
    %cst_30 = arith.constant dense<0.000000e+00> : vector<8xf32>
    %80 = vector.multi_reduction <add>, %79, %cst_30 [1] : vector<8x256xf32> to vector<8xf32>
    %81 = vector.shape_cast %80 : vector<8xf32> to vector<8x1xf32>
    %cst_31 = arith.constant 3.906250e-03 : f32
    %82 = vector.broadcast %cst_31 : f32 to vector<8x1xf32>
    %83 = arith.mulf %81, %82 : vector<8x1xf32>
    %cst_32 = arith.constant 9.99999974E-6 : f32
    %84 = vector.broadcast %cst_32 : f32 to vector<8x1xf32>
    %85 = arith.addf %83, %84 : vector<8x1xf32>
    %86 = math.rsqrt %85 : vector<8x1xf32>
    %87 = vector.broadcast %86 : vector<8x1xf32> to vector<8x256xf32>
    %88 = arith.mulf %78, %87 : vector<8x256xf32>
    %89 = arith.mulf %88, %42 : vector<8x256xf32>
    %90 = arith.addf %40, %89 : vector<8x256xf32>
    %91 = arith.negf %90 : vector<8x256xf32>
    %92 = math.exp %91 : vector<8x256xf32>
    %cst_33 = arith.constant 1.000000e+00 : f32
    %93 = vector.broadcast %cst_33 : f32 to vector<8x256xf32>
    %94 = arith.addf %93, %92 : vector<8x256xf32>
    %95 = arith.divf %93, %94 : vector<8x256xf32>
    %96 = arith.mulf %95, %72 : vector<8x256xf32>
    %97 = arith.addf %70, %96 : vector<8x256xf32>
    %c2_34 = arith.constant 2 : index
    %c0_35 = arith.constant 0 : index
    %c0_36 = arith.constant 0 : index
    %98 = vector.load %arg2[%c2_34, %c0_35, %c0_36] : memref<3x8x256xf32, #tpu.memory_space<vmem>>, vector<1x8x256xf32>
    %99 = vector.shape_cast %98 : vector<1x8x256xf32> to vector<8x256xf32>
    %cst_37 = arith.constant dense<0.000000e+00> : vector<8xf32>
    %100 = vector.multi_reduction <add>, %99, %cst_37 [1] : vector<8x256xf32> to vector<8xf32>
    %101 = vector.shape_cast %100 : vector<8xf32> to vector<8x1xf32>
    %cst_38 = arith.constant 3.906250e-03 : f32
    %102 = vector.broadcast %cst_38 : f32 to vector<8x1xf32>
    %103 = arith.mulf %101, %102 : vector<8x1xf32>
    %104 = vector.broadcast %103 : vector<8x1xf32> to vector<8x256xf32>
    %105 = arith.subf %99, %104 : vector<8x256xf32>
    %106 = arith.mulf %105, %105 : vector<8x256xf32>
    %cst_39 = arith.constant dense<0.000000e+00> : vector<8xf32>
    %107 = vector.multi_reduction <add>, %106, %cst_39 [1] : vector<8x256xf32> to vector<8xf32>
    %108 = vector.shape_cast %107 : vector<8xf32> to vector<8x1xf32>
    %cst_40 = arith.constant 3.906250e-03 : f32
    %109 = vector.broadcast %cst_40 : f32 to vector<8x1xf32>
    %110 = arith.mulf %108, %109 : vector<8x1xf32>
    %cst_41 = arith.constant 9.99999974E-6 : f32
    %111 = vector.broadcast %cst_41 : f32 to vector<8x1xf32>
    %112 = arith.addf %110, %111 : vector<8x1xf32>
    %113 = math.rsqrt %112 : vector<8x1xf32>
    %114 = vector.broadcast %113 : vector<8x1xf32> to vector<8x256xf32>
    %115 = arith.mulf %105, %114 : vector<8x256xf32>
    %116 = arith.mulf %115, %42 : vector<8x256xf32>
    %117 = arith.addf %40, %116 : vector<8x256xf32>
    %118 = arith.negf %117 : vector<8x256xf32>
    %119 = math.exp %118 : vector<8x256xf32>
    %cst_42 = arith.constant 1.000000e+00 : f32
    %120 = vector.broadcast %cst_42 : f32 to vector<8x256xf32>
    %121 = arith.addf %120, %119 : vector<8x256xf32>
    %122 = arith.divf %120, %121 : vector<8x256xf32>
    %123 = arith.mulf %122, %99 : vector<8x256xf32>
    %124 = arith.addf %97, %123 : vector<8x256xf32>
    %125 = vector.broadcast %3 : vector<1x256xf32> to vector<8x256xf32>
    %126 = arith.mulf %125, %124 : vector<8x256xf32>
    %127 = arith.addf %9, %126 : vector<8x256xf32>
    %c0_43 = arith.constant 0 : index
    %c0_44 = arith.constant 0 : index
    %128 = vector.load %arg4[%c0_43, %c0_44] : memref<8x256xf32, #tpu.memory_space<vmem>>, vector<8x256xf32>
    tpu.vector_store %arg4[%c0_43, %c0_44], %127 {strides = array<i32>} : memref<8x256xf32, #tpu.memory_space<vmem>>, vector<8x256xf32>,
    return
  }
  func.func @transform_0(%arg0: i32) -> (i32, i32) {
    %c0_i32 = arith.constant 0 : i32
    %c0_i32_0 = arith.constant 0 : i32
    return %arg0, %c0_i32 : i32, i32
  }
  func.func @transform_1(%arg0: i32) -> (i32, i32, i32) {
    %c0_i32 = arith.constant 0 : i32
    %c0_i32_0 = arith.constant 0 : i32
    %c0_i32_1 = arith.constant 0 : i32
    return %c0_i32, %arg0, %c0_i32_0 : i32, i32, i32
  }
  func.func @transform_2(%arg0: i32) -> (i32, i32) {
    %c0_i32 = arith.constant 0 : i32
    %c0_i32_0 = arith.constant 0 : i32
    %c0_i32_1 = arith.constant 0 : i32
    return %c0_i32, %c0_i32_0 : i32, i32
  }
  func.func @transform_3(%arg0: i32) -> (i32, i32) {
    %c0_i32 = arith.constant 0 : i32
    %c0_i32_0 = arith.constant 0 : i32
    return %arg0, %c0_i32 : i32, i32
  }
}

</mosaic_0001>

<bundles_post_ra>
// kernel: tpu_custom_call.1
= control target key start
LH: loop header
LB: loop body
LE: loop exit
PB: predicated region body
PF: predicated region fallthrough
CT: control target
= control target key end

     0   :  { %8 = vsyncpa [#allocation3], 0  ;;  %s1264_s0 = inlined_call_operand.hbm [shape: f32[16,256], index: 0, kind: input, shape index: {}]   ;;  %s1265_s1 = inlined_call_operand.hbm [shape: f32[3,16,256], index: 1, kind: input, shape index: {}]   ;;  %s1266_s2 = inlined_call_operand.hbm [shape: f32[9,256], index: 2, kind: input, shape index: {}]   ;;  %s1267_s3 = inlined_call_operand.hbm [shape: f32[16,256], index: 3, kind: output, shape index: {}]  }
   0x1   :  { %10 = vsyncpa [#allocation3 + $0x1], 0 }
   0x2   :  { %11 = vsyncpa [#allocation6], 0 }
   0x3   :  { %13 = vsyncpa [#allocation6 + $0x1], 0 }
   0x4   :  { %14 = vsyncpa [#allocation4], 0 }
   0x5   :  { %16 = vsyncpa [#allocation4 + $0x1], 0  ;;  %s945_s12 = smov 0   ;;  %s947_s13 = smov 0  }
   0x6   :  { %s949_s14 = smov 0   ;;  %s951_s15 = smov 0  }
   0x7 LB: > { %s966_s16 = sadd.s32 4294967295, %s916_s15   ;;  %s632_s17 = sadd.s32 4294967294, %s916_s15   ;;  %s916_s15 = sphi %s951_s15, %s1291_s15   ;;  %s912_s14 = sphi %s949_s14, %s1290_s14   ;;  %s908_s13 = sphi %s947_s13, %s1289_s13   ;;  %s904_s12 = sphi %s945_s12, %s1288_s12  }
   0x8   : > { %p42_p0 = scmp.ne.s32.totalorder %s908_s13, %s904_s12  ;;  %p1270_p1 = scmp.eq.s32.totalorder %s966_s16, 0 }
   0x9   : > { %p119_p3 = scmp.eq.s32.totalorder %s632_s17, 1  ;;  %p633_p5 = scmp.ge.s32.totalorder %s916_s15, 1 }
   0xa   : > { %p975_p4 = por %p1270_p1, %p42_p0  ;;  %p126_p7 = scmp.lt.s32.totalorder %s916_s15, 3 }
   0xb   : > { %p980_p6 = por %p119_p3, %p42_p0  ;;  %s918_s21 = smov [#allocation7]  }
   0xc   : > { %s1273_s18 = scalar_select %p975_p4, 1, 0 }
   0xd   : > { %s1274_s19 = scalar_select %p980_p6, 1, 0 }
   0xe   : > { %p985_p8 = pnand %p633_p5, %p126_p7  ;;  %s138_s22 = sshll.u32 %s918_s21, 4  ;;  %s139_s22 = int_to_ptr.vmem [resolvable:$true] %s138_s22 }
   0xf   : > { %s999_s24 = sadd.s32 1, %s916_s15   ;;  %s29_s25 = sadd.s32 1, %s912_s14 }
  0x10   : > { %p675_p9 = pneg %p985_p8  ;;  %s26_s26 = ssub.s32 %s916_s15, %s999_s24 }
  0x11   : > { %s773_s27 = scalar_lea.vmem %s139_s22, 512  ;;  %p781_p5 = scmp.lt.s32.totalorder %s139_s22, %s139_s22 }
  0x12   : > { %p994_p11 = pnand %p675_p9, %p1270_p1  ;;  %p774_p13 = scmp.ne.s32.totalorder %s139_s22, %s773_s27 }
  0x13   : > { %p782_p7 = scmp.lt.s32.totalorder %s773_s27, %s773_s27 }
  0x14   : > { %p764_p12 = pneg %p994_p11 }
  0x15   : > { %p783_p10 = por %p782_p7, %p781_p5 }
  0x16   : > { %p776_p0 = pnand %p774_p13, %p764_p12 }
  0x18   : > { %p777_p3 = pneg %p776_p0 }
  0x1a   : > { %p784_p2 = pnand %p783_p10, %p777_p3 }
  0x1c   : > { %787 = shalt.err (!%p784_p2)
}
  0x1d   : > { %s1268_s28 = smov 256   ;;  %s1269_s29 = smov 16  }
  0x1e   : > { %678 = dma.hbm_to_vmem [thread:$0]  (!%p994_p11), %s1266_s2, 512, %s139_s22, [#allocation6], %s1268_s28, %s1268_s28, %s1269_s29  }
  0x1f   : > { %p27_p2 = scmp.eq.s32.totalorder %s26_s26, 0  ;;  %p36_p9 = scmp.ne.s32.totalorder %s912_s14, %s908_s13 }
  0x20   : > { %p37_p10 = scmp.eq.s32.totalorder %s916_s15, 0  ;;  %p691_p12 = scmp.lt.s32.totalorder %s916_s15, 2 }
  0x21   : > { %s1019_s5 = scalar_select %p27_p2, %s912_s14, %s29_s25  }
  0x22   : > { %p38_p13 = por %p37_p10, %p36_p9  ;;  %p1277_p0 = scmp.eq.s32.totalorder %s966_s16, 1 }
  0x23   : > { %s1028_s7 = sand.u32 1, %s912_s14   ;;  %s660_s8 = sshll.u32 %s916_s15, 8 }
  0x24   : > { %p1023_p3 = por %p1277_p0, %p36_p9  ;;  %s636_s9 = sshll.u32 %s1028_s7, 4 }
  0x25   : > { %s1035_s17 = scalar_lea.hbm %s1264_s0, %s660_s8  ;;  %s156_s21 = scalar_lea.vmem [#allocation2], %s636_s9 }
  0x26   : > { %s1278_s6 = scalar_select %p1023_p3, 1, 0 }
  0x27   : > { %s164_s22 = sshll.u32 %s156_s21, 4  ;;  %p1037_p11 = pnand %p691_p12, %p38_p13  ;;  %s1041_s22 = int_to_ptr.vmem [resolvable:$true] %s164_s22 }
  0x28   : > { %s663_s25 = smul.u32 48, %s1028_s7  ;;  %s1047_s30 = scalar_lea.hbm %s1265_s1, %s660_s8 }
  0x29   : > { %s153_s4 = scalar_lea.sflag [#allocation3], %s1028_s7  ;;  %s788_s10 = scalar_lea.hbm %s1035_s17, 256 }
  0x2a   : > { %p789_p5 = scmp.ne.s32.totalorder %s1035_s17, %s788_s10  ;;  %p790_p7 = pneg %p1037_p11 }
  0x2b   : > { %s793_s21 = scalar_lea.hbm %s1264_s0, 512  ;;  %p794_p10 = scmp.lt.s32.totalorder %s1035_s17, %s1264_s0 }
  0x2c   : > { %p791_p2 = pnand %p790_p7, %p789_p5  ;;  %p795_p12 = scmp.lt.s32.totalorder %s793_s21, %s788_s10 }
  0x2e   : > { %p792_p9 = pneg %p791_p2  ;;  %p796_p13 = por %p795_p12, %p794_p10 }
  0x30   : > { %p797_p0 = pnand %p796_p13, %p792_p9 }
  0x32   : > { %800 = shalt.err (!%p797_p0)
}
  0x33   : > { %s801_s8 = scalar_lea.vmem %s1041_s22, 256  ;;  %s921_s26 = smov [#allocation2]  }
  0x34   : > { %p802_p1 = scmp.ne.s32.totalorder %s1041_s22, %s801_s8  ;;  %s806_s27 = sshll.u32 %s921_s26, 4  ;;  %s807_s27 = int_to_ptr.vmem [resolvable:$false] %s806_s27 }
  0x35   : > { %s808_s9 = scalar_lea.vmem %s807_s27, 512  ;;  %p809_p6 = scmp.lt.s32.totalorder %s1041_s22, %s807_s27 }
  0x36   : > { %p804_p5 = pnand %p802_p1, %p790_p7  ;;  %p810_p3 = scmp.lt.s32.totalorder %s808_s9, %s801_s8 }
  0x38   : > { %p805_p2 = pneg %p804_p5  ;;  %p811_p4 = por %p810_p3, %p809_p6 }
  0x3a   : > { %p812_p10 = pnand %p811_p4, %p805_p2 }
  0x3c   : > { %815 = shalt.err (!%p812_p10)
}
  0x3d   : > { %682 = dma.hbm_to_vmem [thread:$0]  (!%p1037_p11), %s1035_s17, 256, %s1041_s22, %s153_s4  }
  0x3e   : > { %s171_s28 = sand.u32 1, %s916_s15   ;;  %s175_s29 = scalar_lea.vmem [#allocation5], %s663_s25 }
  0x3f   : > { %s182_s10 = sshll.u32 %s175_s29, 4  ;;  %s1079_s11 = scalar_lea.sflag [#allocation6], %s171_s28  ;;  %s1077_s10 = int_to_ptr.vmem [resolvable:$true] %s182_s10 }
  0x40   : > { %s816_s21 = scalar_lea.hbm %s1047_s30, 768  ;;  %s821_s27 = scalar_lea.hbm %s1265_s1, 1536 }
  0x41   : > { %p817_p1 = scmp.ne.s32.totalorder %s1047_s30, %s816_s21  ;;  %p822_p3 = scmp.lt.s32.totalorder %s1047_s30, %s1265_s1 }
  0x42   : > { %p823_p9 = scmp.lt.s32.totalorder %s821_s27, %s816_s21 }
  0x43   : > { %p819_p4 = pnand %p817_p1, %p790_p7 }
  0x44   : > { %p824_p12 = por %p823_p9, %p822_p3 }
  0x45   : > { %p820_p6 = pneg %p819_p4 }
  0x47   : > { %p825_p13 = pnand %p824_p12, %p820_p6 }
  0x49   : > { %828 = shalt.err (!%p825_p13)
}
  0x4a   : > { %s829_s7 = scalar_lea.vmem %s1077_s10, 768  ;;  %s922_s22 = smov [#allocation5]  }
  0x4b   : > { %p830_p0 = scmp.ne.s32.totalorder %s1077_s10, %s829_s7  ;;  %s834_s25 = sshll.u32 %s922_s22, 4  ;;  %s835_s25 = int_to_ptr.vmem [resolvable:$false] %s834_s25 }
  0x4c   : > { %s836_s4 = scalar_lea.vmem %s835_s25, 1536  ;;  %p837_p10 = scmp.lt.s32.totalorder %s1077_s10, %s835_s25 }
  0x4d   : > { %p832_p5 = pnand %p830_p0, %p790_p7  ;;  %p838_p1 = scmp.lt.s32.totalorder %s836_s4, %s829_s7 }
  0x4f   : > { %p833_p2 = pneg %p832_p5  ;;  %p839_p4 = por %p838_p1, %p837_p10 }
  0x51   : > { %p840_p3 = pnand %p839_p4, %p833_p2 }
  0x53   : > { %843 = shalt.err (!%p840_p3)
}
  0x54   : > { %s923_s28 = smov 512   ;;  %s1280_s29 = smov 16  }
  0x55   : > { %s1281_s21 = smov 256   ;;  %194 = sbr.rel (%p985_p8) target bundleno = 477 (0x1dd), region = 32 }
  0x56   : > { %685 = dma.hbm_to_vmem [thread:$0]  (!%p1037_p11), %s1047_s30, 768, %s1077_s10, %s1079_s11, %s923_s28, %s1281_s21, %s1280_s29  }
  0x57   : > { %s1109_s8 = sand.u32 (!%p985_p8), 1, %s908_s13   ;;  %p1282_p7 = scmp.ne.s32.totalorder (!%p985_p8), %s1273_s18, 0 }
  0x58   : > { %s642_s26 = sshll.u32 (!%p985_p8), %s1109_s8, 4  ;;  %s197_s27 = scalar_lea.sflag (!%p985_p8), [#allocation3], %s1109_s8 }
  0x59   : > { %s200_s23 = scalar_lea.vmem (!%p985_p8), [#allocation2], %s642_s26 }
  0x5a   : > { %887 = dma.done.wait (%p1282_p7), %s197_s27, 256  }
  0x5b   : > { %889 = vsyncadd (%p1282_p7), %s197_s27, 4294967040  ;;  %s205_s20 = sand.u32 1, %s966_s16   ;;  %s664_s30 = smul.u32 48, %s1109_s8 }
  0x5c   : > { %s206_s10 = scalar_lea.sflag [#allocation6], %s205_s20 }
  0x5d   : > { %s209_s11 = scalar_lea.vmem [#allocation5], %s664_s30 }
  0x5e   : > { %891 = dma.done.wait (%p1282_p7), %s206_s10, 768  }
  0x5f   : > { %893 = vsyncadd (%p1282_p7), %s206_s10, 4294966528  ;;  %p1283_p8 = scmp.eq.s32.totalorder %s966_s16, 0 }
  0x61   : > { %895 = dma.done.wait (%p1283_p8), [#allocation6], 512   ;;  %p1284_p11 = pmov %p1283_p8 }
  0x62   : > { %v1129_v0 = vld [vmem:[%s200_s23] sm:$0xff]  ;;  %v1131_v1 = vld [vmem:[%s200_s23 + $0x8] sm:$0xff]  ;;  %v1133_v2 = vld [vmem:[%s209_s11 + $0x10] sm:$0xff]  ;;  %v277_v45 = vlaneseq  ;;  %s662_s18 = sshll.u32 %s966_s16, 8  ;;  %s240_s9 = scalar_lea.vmem [#allocation8], %s642_s26 }
  0x63   : > { %897 = vsyncadd (%p1284_p11), [#allocation6], 4294966784  ;;  %v260_v3 = vadd.f32 %v1131_v1, %v1129_v0  ;;  %v1137_v4 = vld [vmem:[%s209_s11 + $0x18] sm:$0xff]  ;;  %v1139_v5 = vld [vmem:[%s209_s11] sm:$0xff]  ;;  %s530_s17 = sshll.u32 %s240_s9, 4  ;;  %s1227_s25 = scalar_lea.hbm %s1267_s3, %s662_s18  ;;  %s531_s17 = int_to_ptr.vmem [resolvable:$true] %s530_s17 }
  0x64   : > { %v1141_v6 = vld [vmem:[%s209_s11 + $0x8] sm:$0xff]  ;;  %v423_v7 = vadd.f32 %v1137_v4, %v1133_v2  ;;  %v1145_v8 = vld [vmem:[%s209_s11 + $0x20] sm:$0xff]  ;;  %v278_v50 = vshrl.u32 %v277_v45, 7  ;;  %s516_s4 = scalar_lea.sflag [#allocation4], %s1109_s8  ;;  %s844_s28 = scalar_lea.vmem %s531_s17, 256 }
  0x65   : > { %v1147_v9 = vld [vmem:[%s209_s11 + $0x28] sm:$0xff]  ;;  %261 = vadd.xlane.f32.xlu0 %v260_v3  ;;  %v384_v10 = vadd.f32 %v1141_v6, %v1139_v5  ;;  %p845_p6 = scmp.ne.s32.totalorder %s531_s17, %s844_s28  ;;  %p1285_p9 = scmp.ne.s32.totalorder %s1278_s6, 0 }
  0x66   : > { %424 = vadd.xlane.f32.xlu1 %v423_v7  ;;  %v462_v11 = vadd.f32 %v1147_v9, %v1145_v8  ;;  %v1185_v54 = vsub.s32 0, %v278_v50  ;;  %v1187_v55 = vsub.s32 1, %v278_v50  ;;  %v251_v56 = vld [vmem:[#allocation7 + $0x5] ss:$8 sm:$0x3]  ;;  %s924_s16 = smov [#allocation8]  }
  0x67   : > { %v253_v57 = vld [vmem:[#allocation7 + $0x6] ss:$8 sm:$0x3]  ;;  %v241_v58 = vld [vmem:[#allocation7] ss:$8 sm:$0x3]  ;;  %p846_p12 = pnand %p845_p6, %p1285_p9 }
  0x68   : > { %v280_v59 = vrot.slane %v251_v56, %v1185_v54  ;;  %v284_v60 = vrot.slane %v251_v56, %v1187_v55  ;;  %v245_v62 = vld [vmem:[#allocation7 + $0x2] ss:$8 sm:$0x3]  ;;  %v249_v63 = vld [vmem:[#allocation7 + $0x4] ss:$8 sm:$0x3] }
  0x69   : > { %385 = vadd.xlane.f32.xlu0 %v384_v10  ;;  %v293_v10 = vrot.slane %v253_v57, %v1185_v54  ;;  %p847_p13 = pneg %p846_p12  ;;  %s848_s29 = sshll.u32 %s924_s16, 4  ;;  %s849_s29 = int_to_ptr.vmem [resolvable:$false] %s848_s29 }
  0x6a   : > { %463 = vadd.xlane.f32.xlu1 %v462_v11  ;;  %v297_v11 = vrot.slane %v253_v57, %v1187_v55  ;;  %s850_s21 = scalar_lea.vmem %s849_s29, 512  ;;  %p851_p0 = scmp.lt.s32.totalorder %s531_s17, %s849_s29 }
  0x6b   : > { %p852_p5 = scmp.lt.s32.totalorder %s850_s21, %s844_s28 }
  0x6d   : > { %p853_p2 = por %p852_p5, %p851_p0 }
  0x6f   : > { %p854_p10 = pnand %p853_p2, %p847_p13 }
  0xee   : > { %v262_v12 = vpop.xlane.xlu0 %261 }
  0xef   : > { %v263_v13 = vmul.f32 0.00390625, %v262_v12  ;;  %v425_v14 = vpop.xlane.xlu1 %424  ;;  %v243_v12 = vld [vmem:[#allocation7 + $0x1] ss:$8 sm:$0x3] }
  0xf0   : > { %v426_v15 = vmul.f32 0.00390625, %v425_v14  ;;  %v310_v14 = vrot.slane %v241_v58, %v1187_v55 }
  0xf1   : > { %v264_v16 = vsub.f32 %v1129_v0, %v263_v13  ;;  %v265_v17 = vsub.f32 %v1131_v1, %v263_v13  ;;  %v306_v13 = vrot.slane %v241_v58, %v1185_v54 }
  0xf2   : > { %v1156_v18 = vsub.f32 %v1133_v2, %v426_v15  ;;  %v1159_v19 = vsub.f32 %v1137_v4, %v426_v15  ;;  %v386_v20 = vpop.xlane.xlu0 %385  ;;  %v257_v15 = vld [vmem:[#allocation7 + $0x10] ss:$8 sm:$0x3] }
  0xf3   : > { %v387_v21 = vmul.f32 0.00390625, %v386_v20  ;;  %v464_v22 = vpop.xlane.xlu1 %463  ;;  %v266_v23 = vmul.f32 %v264_v16, %v264_v16  ;;  %v267_v24 = vmul.f32 %v265_v17, %v265_v17 }
  0xf4   : > { %v465_v25 = vmul.f32 0.00390625, %v464_v22  ;;  %v429_v26 = vmul.f32 %v1156_v18, %v1156_v18  ;;  %v430_v27 = vmul.f32 %v1159_v19, %v1159_v19  ;;  %v332_v22 = vrot.slane %v245_v62, %v1185_v54 }
  0xf5   : > { %v1166_v28 = vsub.f32 %v1139_v5, %v387_v21  ;;  %v1169_v29 = vsub.f32 %v1141_v6, %v387_v21  ;;  %v268_v30 = vadd.f32 %v267_v24, %v266_v23  ;;  %v336_v23 = vrot.slane %v245_v62, %v1187_v55  ;;  %v255_v24 = vld [vmem:[#allocation7 + $0x7] ss:$8 sm:$0x3] }
  0xf6   : > { %v1172_v31 = vsub.f32 %v1145_v8, %v465_v25  ;;  %v1175_v32 = vsub.f32 %v1147_v9, %v465_v25  ;;  %v431_v33 = vadd.f32 %v430_v27, %v429_v26  ;;  %v345_v27 = vrot.slane %v243_v12, %v1185_v54 }
  0xf7   : > { %269 = vadd.xlane.f32.xlu0 %v268_v30  ;;  %v390_v34 = vmul.f32 %v1166_v28, %v1166_v28  ;;  %v391_v35 = vmul.f32 %v1169_v29, %v1169_v29  ;;  %v349_v30 = vrot.slane %v243_v12, %v1187_v55 }
  0xf8   : > { %v468_v36 = vmul.f32 %v1172_v31, %v1172_v31  ;;  %v469_v37 = vmul.f32 %v1175_v32, %v1175_v32 }
  0xf9   : > { %v392_v38 = vadd.f32 %v391_v35, %v390_v34  ;;  %v362_v34 = vrot.slane %v257_v15, %v1187_v55  ;;  %v373_v35 = vrot.slane %v255_v24, %v1185_v54 }
  0xfa   : > { %v470_v39 = vadd.f32 %v469_v37, %v468_v36  ;;  %v377_v36 = vrot.slane %v255_v24, %v1187_v55 }
  0xfb   : > { %432 = vadd.xlane.f32.xlu0 %v431_v33  ;;  %393 = vadd.xlane.f32.xlu1 %v392_v38  ;;  %v358_v33 = vrot.slane %v257_v15, %v1185_v54 }
  0xff   : > { %471 = vadd.xlane.f32.xlu1 %v470_v39 }
 0x180   : > { %v270_v40 = vpop.xlane.xlu0 %269 }
 0x181   : > { %v271_v41 = vmul.f32 0.00390625, %v270_v40 }
 0x183   : > { %v272_v42 = vadd.f32 1e-05, %v271_v41 }
 0x184   : > { %v394_v43 = vpop.xlane.xlu1 %393  ;;  %v433_v44 = vpop.xlane.xlu0 %432 }
 0x185   : > { %730 = vrsqrt.f32 %v272_v42  ;;  %v395_v46 = vmul.f32 0.00390625, %v394_v43  ;;  %v434_v47 = vmul.f32 0.00390625, %v433_v44 }
 0x187   : > { %v396_v48 = vadd.f32 1e-05, %v395_v46  ;;  %v435_v51 = vadd.f32 1e-05, %v434_v47 }
 0x188   : > { %v472_v49 = vpop.xlane.xlu1 %471 }
 0x189   : > { %v473_v52 = vmul.f32 0.00390625, %v472_v49  ;;  %732 = vrsqrt.f32 %v396_v48 }
 0x18a   : > { %734 = vrsqrt.f32 %v435_v51 }
 0x18b   : > { %v474_v53 = vadd.f32 1e-05, %v473_v52 }
 0x18d   : > { %736 = vrsqrt.f32 %v474_v53 }
 0x192   : > { %v731_v61 = vpop.eup %730 }
 0x193   : > { %v274_v3 = vmul.f32 %v731_v61, %v264_v16  ;;  %v275_v7 = vmul.f32 %v731_v61, %v265_v17  ;;  %v319_v16 = vrot.slane %v249_v63, %v1185_v54  ;;  %v323_v17 = vrot.slane %v249_v63, %v1187_v55 }
 0x195   : > { %v287_v20 = vmul.f32 %v280_v59, %v274_v3  ;;  %v288_v21 = vmul.f32 %v284_v60, %v275_v7 }
 0x196   : > { %v733_v37 = vpop.eup %732 }
 0x197   : > { %v300_v25 = vadd.f32 %v293_v10, %v287_v20  ;;  %v301_v26 = vadd.f32 %v297_v11, %v288_v21  ;;  %v735_v42 = vpop.eup %734  ;;  %v398_v48 = vmul.f32 %v733_v37, %v1166_v28  ;;  %v399_v49 = vmul.f32 %v733_v37, %v1169_v29 }
 0x198   : > { %v437_v56 = vmul.f32 %v735_v42, %v1156_v18  ;;  %v438_v57 = vmul.f32 %v735_v42, %v1159_v19 }
 0x199   : > { %v313_v38 = vmul.f32 %v306_v13, %v300_v25  ;;  %v314_v39 = vmul.f32 %v310_v14, %v301_v26  ;;  %v339_v40 = vmul.f32 %v332_v22, %v300_v25  ;;  %v340_v41 = vmul.f32 %v336_v23, %v301_v26 }
 0x19a   : > { %v737_v43 = vpop.eup %736 }
 0x19b   : > { %v352_v44 = vadd.f32 %v345_v27, %v339_v40  ;;  %v353_v45 = vadd.f32 %v349_v30, %v340_v41  ;;  %v326_v46 = vadd.f32 %v319_v16, %v313_v38  ;;  %v327_v47 = vadd.f32 %v323_v17, %v314_v39  ;;  %v247_v40 = vld [vmem:[#allocation7 + $0x3] ss:$8 sm:$0x3] }
 0x19c   : > { %v476_v58 = vmul.f32 %v737_v43, %v1172_v31  ;;  %v477_v59 = vmul.f32 %v737_v43, %v1175_v32 }
 0x19d   : > { %v365_v50 = vmul.f32 %v358_v33, %v352_v44  ;;  %v366_v51 = vmul.f32 %v362_v34, %v353_v45  ;;  %v380_v52 = vmul.f32 %v373_v35, %v352_v44  ;;  %v381_v53 = vmul.f32 %v377_v36, %v353_v45 }
 0x19f   : > { %v367_v60 = vadd.f32 %v365_v50, %v326_v46  ;;  %v368_v61 = vadd.f32 %v366_v51, %v327_v47  ;;  %v400_v62 = vmul.f32 %v398_v48, %v380_v52  ;;  %v401_v63 = vmul.f32 %v399_v49, %v381_v53 }
 0x1a0   : > { %v439_v3 = vmul.f32 %v437_v56, %v380_v52  ;;  %v440_v28 = vmul.f32 %v438_v57, %v381_v53  ;;  %v478_v7 = vmul.f32 %v476_v58, %v380_v52  ;;  %v479_v29 = vmul.f32 %v477_v59, %v381_v53 }
 0x1a1   : > { %v402_v10 = vadd.f32 %v400_v62, %v367_v60  ;;  %v403_v11 = vadd.f32 %v401_v63, %v368_v61  ;;  %v502_v49 = vrot.slane %v247_v40, %v1185_v54  ;;  %v506_v51 = vrot.slane %v247_v40, %v1187_v55 }
 0x1a2   : > { %v441_v12 = vadd.f32 %v439_v3, %v367_v60  ;;  %v442_v13 = vadd.f32 %v440_v28, %v368_v61  ;;  %v480_v14 = vadd.f32 %v478_v7, %v367_v60  ;;  %v481_v18 = vadd.f32 %v479_v29, %v368_v61 }
 0x1a3   : > { %v645_v15 = vmul.f32 -1.442695, %v402_v10  ;;  %v646_v19 = vmul.f32 -1.442695, %v403_v11 }
 0x1a4   : > { %v649_v20 = vmul.f32 -1.442695, %v441_v12  ;;  %v650_v31 = vmul.f32 -1.442695, %v442_v13  ;;  %v653_v32 = vmul.f32 -1.442695, %v480_v14 }
 0x1a5   : > { %738 = vpow2.f32 %v645_v15  ;;  %v654_v21 = vmul.f32 -1.442695, %v481_v18 }
 0x1a6   : > { %740 = vpow2.f32 %v646_v19 }
 0x1a7   : > { %742 = vpow2.f32 %v649_v20 }
 0x1a8   : > { %744 = vpow2.f32 %v650_v31 }
 0x1a9   : > { %746 = vpow2.f32 %v653_v32 }
 0x1aa   : > { %748 = vpow2.f32 %v654_v21 }
 0x1b2   : > { %v739_v22 = vpop.eup %738 }
 0x1b3   : > { %v741_v23 = vpop.eup %740  ;;  %v410_v24 = vadd.f32 1.0, %v739_v22 }
 0x1b4   : > { %v743_v16 = vpop.eup %742  ;;  %v411_v17 = vadd.f32 1.0, %v741_v23 }
 0x1b5   : > { %v745_v25 = vpop.eup %744  ;;  %750 = vrcp.f32 %v410_v24  ;;  %v449_v26 = vadd.f32 1.0, %v743_v16 }
 0x1b6   : > { %v747_v27 = vpop.eup %746  ;;  %752 = vrcp.f32 %v411_v17  ;;  %v450_v30 = vadd.f32 1.0, %v745_v25 }
 0x1b7   : > { %v749_v33 = vpop.eup %748  ;;  %754 = vrcp.f32 %v449_v26  ;;  %v488_v34 = vadd.f32 1.0, %v747_v27 }
 0x1b8   : > { %756 = vrcp.f32 %v450_v30  ;;  %v489_v35 = vadd.f32 1.0, %v749_v33 }
 0x1b9   : > { %758 = vrcp.f32 %v488_v34 }
 0x1ba   : > { %760 = vrcp.f32 %v489_v35 }
 0x1c2   : > { %v751_v36 = vpop.eup %750 }
 0x1c3   : > { %v753_v37 = vpop.eup %752  ;;  %v416_v38 = vmul.f32 %v751_v36, %v1139_v5 }
 0x1c4   : > { %v755_v39 = vpop.eup %754  ;;  %v417_v41 = vmul.f32 %v753_v37, %v1141_v6 }
 0x1c5   : > { %v757_v42 = vpop.eup %756  ;;  %v455_v43 = vmul.f32 %v755_v39, %v1133_v2 }
 0x1c6   : > { %v759_v44 = vpop.eup %758  ;;  %v456_v45 = vmul.f32 %v757_v42, %v1137_v4 }
 0x1c7   : > { %v761_v46 = vpop.eup %760  ;;  %v457_v47 = vadd.f32 %v455_v43, %v416_v38  ;;  %v494_v48 = vmul.f32 %v759_v44, %v1145_v8 }
 0x1c8   : > { %v458_v50 = vadd.f32 %v456_v45, %v417_v41  ;;  %v495_v5 = vmul.f32 %v761_v46, %v1147_v9 }
 0x1c9   : > { %v496_v6 = vadd.f32 %v494_v48, %v457_v47 }
 0x1ca   : > { %v497_v52 = vadd.f32 %v495_v5, %v458_v50 }
 0x1cb   : > { %v509_v53 = vmul.f32 %v502_v49, %v496_v6 }
 0x1cc   : > { %v510_v2 = vmul.f32 %v506_v51, %v497_v52 }
 0x1cd   : > { %v511_v4 = vadd.f32 %v509_v53, %v1129_v0 }
 0x1ce   : > { %v512_v8 = vadd.f32 %v510_v2, %v1131_v1 }
 0x1cf   : > { %513 = vst [vmem:[%s240_s9] sm:$0xff] %v511_v4 }
 0x1d0   : > { %514 = vst [vmem:[%s240_s9 + $0x8] sm:$0xff] %v512_v8 }
 0x1d1   : > { %857 = shalt.err (!%p854_p10)
}
 0x1d2   : > { %s858_s26 = scalar_lea.hbm %s1227_s25, 256  ;;  %s862_s23 = scalar_lea.hbm %s1267_s3, 512 }
 0x1d3   : > { %p859_p1 = scmp.ne.s32.totalorder %s1227_s25, %s858_s26  ;;  %p863_p7 = scmp.lt.s32.totalorder %s1227_s25, %s1267_s3 }
 0x1d4   : > { %p864_p8 = scmp.lt.s32.totalorder %s862_s23, %s858_s26 }
 0x1d5   : > { %p860_p4 = pnand %p859_p1, %p1285_p9 }
 0x1d6   : > { %p865_p11 = por %p864_p8, %p863_p7 }
 0x1d7   : > { %p861_p3 = pneg %p860_p4 }
 0x1d9   : > { %p866_p6 = pnand %p865_p11, %p861_p3 }
 0x1db   : > { %869 = shalt.err (!%p866_p6)
}
 0x1dc   : > { %673 = dma.vmem_to_hbm [thread:$0]  (%p1285_p9), %s531_s17, 256, %s1227_s25, %s516_s4  }
 0x1dd PF: > { %s542_s10 = sand.u32 1, %s904_s12   ;;  %p1286_p12 = scmp.ne.s32.totalorder %s1274_s19, 0 }
 0x1de   : > { %p1287_p13 = scmp.ge.s32.totalorder %s916_s15, 2  ;;  %s543_s11 = scalar_lea.sflag [#allocation4], %s542_s10 }
 0x1e0   : > { %p687_p0 = pnand %p1287_p13, %p1286_p12 }
 0x1e2   : > { %p688_p5 = pneg %p687_p0 }
 0x1e4   : > { %899 = dma.done.wait (%p688_p5), %s543_s11, 256  }
 0x1e5   : > { %901 = vsyncadd (%p688_p5), %s543_s11, 4294967040  ;;  %p19_p2 = scmp.ge.s32.totalorder %s999_s24, 4   ;;  %s1288_s12 = smov %s908_s13 }
 0x1e6   : > { %s1289_s13 = smov %s912_s14  ;;  %s1290_s14 = smov %s1019_s5 }
 0x1e7   : > { %s1291_s15 = smov %s999_s24  ;;  %21 = sbr.rel (!%p19_p2) target bundleno = 7 (0x7), region = 104 }
 0x1ec   :  { %548 = vsyncpa [#allocation3], 1 }
 0x1ed   :  { %550 = vsyncpa [#allocation3 + $0x1], 1 }
 0x1ee   :  { %551 = vsyncpa [#allocation6], 1 }
 0x1ef   :  { %553 = vsyncpa [#allocation6 + $0x1], 1 }
 0x1f0   :  { %554 = vsyncpa [#allocation4], 1 }
 0x1f1   :  { %556 = vsyncpa [#allocation4 + $0x1], 1 }

</bundles_post_ra>
